<compile_context>
chip_gen: v5e
topology: v5e:2x2
jax: 0.10.0
libtpu: 0.0.40
codegen_flags: <defaults>
</compile_context>

<pallas_src>
import functools

import numpy as np
import jax
import jax.numpy as jnp
from jax.experimental import pallas as pl
from jax.experimental.pallas import tpu as pltpu


def mm_centers(N: int = 10, d: float = 1.0) -> jnp.ndarray:
    """Deterministic construction of the max-Mahalanobis centers (N, N-1)."""
    nodes = np.zeros((N, N - 1))
    nodes[0, 0] = d / 2
    nodes[1, 0] = -d / 2
    for i in range(2, N):
        r = np.sqrt((nodes[0] ** 2).sum())
        c = np.sqrt(d ** 2 - r ** 2)
        a = (d ** 2 - 2 * r ** 2) / c / 2
        b = d ** 2 / c / 2
        nodes[:i, i - 1] -= a
        nodes[i, i - 1] += b
    return jnp.asarray(nodes, dtype=jnp.float32)


def _mmc_loss_kernel(x_ref, labels_ref, centers_ref, out_ref, acc_ref,
                     *, true_b, tiles_per_split, n_classes, n_dims):
    # x_ref:       (tile_b, lane_block)   native dtype (f32 / bf16 / ...)
    # labels_ref:  (tile_b, 1)            int32
    # centers_ref: (N, lane_block)        float32, zero-padded past N-1
    # out_ref:     (1, 1, 1)              float32 (one partial sum per split)
    # acc_ref:     (acc_rows, lane_block) float32 per-lane partial sums
    c = pl.program_id(0)          # split (parallel) index
    t = pl.program_id(1)          # batch-tile (reduction) index
    tile_b, lane = x_ref.shape

    @pl.when(t == 0)
    def _():
        acc_ref[...] = jnp.zeros_like(acc_ref)

    # Gather centers[labels] as a one-hot matmul (MXU; tiny contraction).
    labels = labels_ref[...]                                               # (tile_b, 1)
    class_iota = jax.lax.broadcasted_iota(jnp.int32, (tile_b, n_classes), 1)
    onehot = (labels == class_iota).astype(jnp.float32)                    # (tile_b, N)
    centers_g = jnp.dot(onehot, centers_ref[...],
                        preferred_element_type=jnp.float32)                # (tile_b, lane)

    # Squared distance per element.  Lanes >= N-1 of centers_g are zero, so
    # those lanes hold x^2 junk; they are discarded by the epilogue lane mask
    # (cheaper than masking every step).
    xs = x_ref[...].astype(jnp.float32)
    diff = xs - centers_g
    sq = diff * diff                                                       # (tile_b, lane)

    def _accumulate(vals):
        # Cheap sublane-group add (VPU only); no cross-lane reduce per step.
        if tile_b % 8 == 0:
            acc_ref[...] += vals.reshape(tile_b // 8, 8, lane).sum(axis=0)
        else:  # tiny / odd batches only
            acc_ref[...] += jnp.sum(vals, axis=0, keepdims=True)

    # Row-validity mask only on tiles that overrun the true batch size
    # (partial last tile / clamped dummy tiles of an uneven split).
    row0 = (c * tiles_per_split + t) * tile_b
    needs_mask = row0 + tile_b > true_b

    @pl.when(needs_mask)
    def _():
        rows = row0 + jax.lax.broadcasted_iota(jnp.int32, (tile_b, 1), 0)
        _accumulate(jnp.where(rows < true_b, sq, 0.0))

    @pl.when(jnp.logical_not(needs_mask))
    def _():
        _accumulate(sq)

    @pl.when(t == pl.num_programs(1) - 1)
    def _():
        lane_iota = jax.lax.broadcasted_iota(jnp.int32, acc_ref.shape, 1)
        acc_m = jnp.where(lane_iota < n_dims, acc_ref[...], 0.0)
        out_ref[0] = jnp.sum(acc_m, axis=(0, 1), keepdims=True)


def _pick_tile_b(requested: int, B: int, itemsize: int) -> int:
    """Largest usable batch tile <= requested and <= B, respecting packing."""
    sub = 8 * max(1, 4 // max(1, itemsize))     # 8 (f32), 16 (bf16), 32 (int8)
    t = min(requested, B)
    if t >= sub:
        return (t // sub) * sub
    if t >= 8:
        return (t // 8) * 8
    return t


def mmc_loss(x: jnp.ndarray, labels: jnp.ndarray, centers: jnp.ndarray,
             *, tile_b: int = 4096, num_splits: int = 1) -> jnp.ndarray:
    """Pallas implementation of MMCLoss.forward. Returns a scalar float32.

    num_splits=1 is right for single-TensorCore chips (v5e/v6e); use
    num_splits=2 on v7x to spread batch tiles across both TensorCores.
    """
    B, F = x.shape
    N, Nm1 = centers.shape
    assert F >= Nm1, "feature dim must be >= N-1"

    # Only fetch the lane blocks that actually cover the first N-1 columns.
    if F <= 128:
        lane_block = F
    else:
        lane_block = min(((Nm1 + 127) // 128) * 128, F)

    tile_b = _pick_tile_b(tile_b, B, x.dtype.itemsize)
    nb = -(-B // tile_b)                       # number of batch tiles
    num_splits = min(num_splits, nb)
    tps = -(-nb // num_splits)                 # tiles per split
    exact_split = (num_splits * tps == nb)

    labels2d = labels.astype(jnp.int32).reshape(B, 1)
    centers_pad = jnp.zeros((N, lane_block), jnp.float32)
    centers_pad = centers_pad.at[:, :Nm1].set(centers.astype(jnp.float32))

    if exact_split:
        def _tile_idx(c, t):
            return (c * tps + t, 0)
    else:
        def _tile_idx(c, t):
            # Clamp over-allocated split tiles to the last valid tile; their
            # contribution is zeroed in-kernel by the row mask.
            return (jnp.minimum(c * tps + t, nb - 1), 0)

    acc_rows = 8 if tile_b % 8 == 0 else 1

    grid_spec = pltpu.PrefetchScalarGridSpec(
        num_scalar_prefetch=0,
        grid=(num_splits, tps),
        in_specs=[
            # NOTE: if a profile on v5e shows exposed (strided) DMA, add
            # pipeline_mode=pl.Buffered(3) here.
            pl.BlockSpec((tile_b, lane_block), _tile_idx),
            pl.BlockSpec((tile_b, 1), _tile_idx),
            pl.BlockSpec((N, lane_block), lambda c, t: (0, 0)),
        ],
        out_specs=pl.BlockSpec((1, 1, 1), lambda c, t: (c, 0, 0)),
        scratch_shapes=[pltpu.VMEM((acc_rows, lane_block), jnp.float32)],
    )

    bytes_accessed = (B * lane_block * x.dtype.itemsize   # x lane slice
                      + B * 4                             # labels
                      + N * lane_block * 4                # centers
                      + num_splits * 4)                   # partial sums
    flops = 2 * B * N * lane_block + 3 * B * lane_block

    partials = pl.pallas_call(
        functools.partial(_mmc_loss_kernel, true_b=B, tiles_per_split=tps,
                          n_classes=N, n_dims=Nm1),
        out_shape=jax.ShapeDtypeStruct((num_splits, 1, 1), jnp.float32),
        grid_spec=grid_spec,
        compiler_params=pltpu.CompilerParams(
            # On v7x, consider pltpu.CORE_PARALLEL for the split axis.
            dimension_semantics=("parallel", "arbitrary")),
        cost_estimate=pl.CostEstimate(
            flops=flops, transcendentals=0, bytes_accessed=bytes_accessed),
    )(x, labels2d, centers_pad)

    return jnp.sum(partials) / jnp.float32(B)


def mmc_loss_ref(x, labels, centers):
    """Pure-JAX reference for validation."""
    Nm1 = centers.shape[1]
    xs = x[:, :Nm1].astype(jnp.float32)
    c = centers[labels]
    return jnp.mean(jnp.sum((xs - c) ** 2, axis=1))


if __name__ == "__main__":
    N, d = 10, 1.0
    centers = mm_centers(N, d)

    key = jax.random.PRNGKey(0)
    k1, k2, k3, k4 = jax.random.split(key, 4)

    # Small case: batch=8, feature dim=16 (>= N-1 = 9), single tile, no split.
    B, F = 8, 16
    x = jax.random.normal(k1, (B, F), dtype=jnp.float32)
    labels = jax.random.randint(k2, (B,), 0, N, dtype=jnp.int32)
    loss = jax.block_until_ready(mmc_loss(x, labels, centers))
    ref = mmc_loss_ref(x, labels, centers)
    assert jnp.allclose(loss, ref, rtol=1e-5, atol=1e-5), (loss, ref)

    # Larger bf16 case exercising batch tiling, the lane slice (F > 128),
    # the guarded remainder mask, and the dual-core split with a dummy tile.
    B2, F2 = 136, 256
    x2 = jax.random.normal(k3, (B2, F2), dtype=jnp.bfloat16)
    labels2 = jax.random.randint(k4, (B2,), 0, N, dtype=jnp.int32)
    loss2 = jax.block_until_ready(
        mmc_loss(x2, labels2, centers, tile_b=64, num_splits=2))
    ref2 = mmc_loss_ref(x2, labels2, centers)
    assert jnp.allclose(loss2, ref2, rtol=1e-3, atol=1e-3), (loss2, ref2)

    # Default (large-tile, single-split) path on the same bf16 data.
    loss3 = jax.block_until_ready(mmc_loss(x2, labels2, centers))
    assert jnp.allclose(loss3, ref2, rtol=1e-3, atol=1e-3), (loss3, ref2)

    print("KERNEL_OK")
</pallas_src>

<mosaic_0001>
module attributes {stable_mosaic.version = 11 : i64} {
  func.func @_mmc_loss_kernel(%arg0: i32, %arg1: i32, %arg2: memref<8x16xf32, #tpu.memory_space<vmem>>, %arg3: memref<8x1xi32, #tpu.memory_space<vmem>>, %arg4: memref<10x16xf32, #tpu.memory_space<vmem>>, %arg5: memref<1x1x1xf32, #tpu.memory_space<vmem>>, %arg6: memref<8x16xf32, #tpu.memory_space<vmem>>) attributes {dimension_semantics = [#tpu.dimension_semantics<parallel>, #tpu.dimension_semantics<arbitrary>], iteration_bounds = array<i64: 1, 1>, scalar_prefetch = 0 : i64, scratch_operands = 1 : i64, tpu.core_type = #tpu.core_type<tc>, window_params = [{transform_indices = @transform_0, window_bounds = array<i64: 8, 16>}, {transform_indices = @transform_1, window_bounds = array<i64: 8, 1>}, {pipeline_mode = #tpu.pipeline_mode<synchronous>, transform_indices = @transform_2, window_bounds = array<i64: 10, 16>}, {transform_indices = @transform_3, window_bounds = array<i64: 1, 1, 1>}]} {
    %c0_i32 = arith.constant 0 : i32
    %0 = arith.cmpi eq, %arg1, %c0_i32 : i32
    %1 = arith.extui %0 : i1 to i32
    %c0_i32_0 = arith.constant 0 : i32
    %2 = arith.cmpi ne, %1, %c0_i32_0 : i32
    scf.if %2 {
      %cst_12 = arith.constant 0.000000e+00 : f32
      %27 = vector.broadcast %cst_12 : f32 to vector<8x16xf32>
      %c0_13 = arith.constant 0 : index
      %c0_14 = arith.constant 0 : index
      %28 = vector.load %arg6[%c0_13, %c0_14] : memref<8x16xf32, #tpu.memory_space<vmem>>, vector<8x16xf32>
      tpu.vector_store %arg6[%c0_13, %c0_14], %27 {strides = array<i32>} : memref<8x16xf32, #tpu.memory_space<vmem>>, vector<8x16xf32>,
    } else {
    }
    %c0 = arith.constant 0 : index
    %c0_1 = arith.constant 0 : index
    %3 = vector.load %arg3[%c0, %c0_1] : memref<8x1xi32, #tpu.memory_space<vmem>>, vector<8x1xi32>
    %4 = tpu.iota {dimensions = array<i32: 1>} : vector<8x10xi32>
    %5 = vector.broadcast %3 : vector<8x1xi32> to vector<8x10xi32>
    %6 = arith.cmpi eq, %5, %4 : vector<8x10xi32>
    %7 = arith.extui %6 : vector<8x10xi1> to vector<8x10xi32>
    %8 = arith.sitofp %7 : vector<8x10xi32> to vector<8x10xf32>
    %c0_2 = arith.constant 0 : index
    %c0_3 = arith.constant 0 : index
    %9 = vector.load %arg4[%c0_2, %c0_3] : memref<10x16xf32, #tpu.memory_space<vmem>>, vector<10x16xf32>
    %cst = arith.constant dense<0.000000e+00> : vector<8x16xf32>
    %10 = tpu.matmul %8, %9, %cst {dimension_numbers = #tpu.dot_dimension_numbers<[1], [0], [0], [1], [0, 0, 1, 1], [], []>} : vector<8x10xf32>, vector<10x16xf32>, vector<8x16xf32> -> vector<8x16xf32>
    %c0_4 = arith.constant 0 : index
    %c0_5 = arith.constant 0 : index
    %11 = vector.load %arg2[%c0_4, %c0_5] : memref<8x16xf32, #tpu.memory_space<vmem>>, vector<8x16xf32>
    %12 = arith.subf %11, %10 : vector<8x16xf32>
    %13 = arith.mulf %12, %12 : vector<8x16xf32>
    %c1_i32 = arith.constant 1 : i32
    %14 = arith.muli %arg0, %c1_i32 : i32
    %15 = arith.addi %14, %arg1 : i32
    %c8_i32 = arith.constant 8 : i32
    %16 = arith.muli %15, %c8_i32 : i32
    %c8_i32_6 = arith.constant 8 : i32
    %17 = arith.addi %16, %c8_i32_6 : i32
    %c8_i32_7 = arith.constant 8 : i32
    %18 = arith.cmpi sgt, %17, %c8_i32_7 : i32
    %19 = arith.extui %18 : i1 to i32
    %c0_i32_8 = arith.constant 0 : i32
    %20 = arith.cmpi ne, %19, %c0_i32_8 : i32
    scf.if %20 {
      %27 = tpu.iota {dimensions = array<i32: 0>} : vector<8x1xi32>
      %28 = vector.broadcast %16 : i32 to vector<8x1xi32>
      %29 = arith.addi %28, %27 : vector<8x1xi32>
      %c8_i32_12 = arith.constant 8 : i32
      %30 = vector.broadcast %c8_i32_12 : i32 to vector<8x1xi32>
      %31 = arith.cmpi slt, %29, %30 : vector<8x1xi32>
      %cst_13 = arith.constant 0.000000e+00 : f32
      %32 = vector.shape_cast %31 : vector<8x1xi1> to vector<8x1xi1>
      %33 = vector.broadcast %32 : vector<8x1xi1> to vector<8x16xi1>
      %34 = vector.broadcast %cst_13 : f32 to vector<8x16xf32>
      %35 = arith.select %33, %13, %34 : vector<8x16xi1>, vector<8x16xf32>
      %c0_14 = arith.constant 0 : index
      %c0_15 = arith.constant 0 : index
      %36 = vector.load %arg6[%c0_14, %c0_15] : memref<8x16xf32, #tpu.memory_space<vmem>>, vector<8x16xf32>
      %37 = vector.shape_cast %35 : vector<8x16xf32> to vector<1x8x16xf32>
      %cst_16 = arith.constant dense<0.000000e+00> : vector<8x16xf32>
      %38 = vector.multi_reduction <add>, %37, %cst_16 [0] : vector<1x8x16xf32> to vector<8x16xf32>
      %39 = arith.addf %36, %38 : vector<8x16xf32>
      %c0_17 = arith.constant 0 : index
      %c0_18 = arith.constant 0 : index
      %40 = vector.load %arg6[%c0_17, %c0_18] : memref<8x16xf32, #tpu.memory_space<vmem>>, vector<8x16xf32>
      tpu.vector_store %arg6[%c0_17, %c0_18], %39 {strides = array<i32>} : memref<8x16xf32, #tpu.memory_space<vmem>>, vector<8x16xf32>,
    } else {
    }
    %true = arith.constant true
    %21 = arith.xori %18, %true : i1
    %22 = arith.extui %21 : i1 to i32
    %c0_i32_9 = arith.constant 0 : i32
    %23 = arith.cmpi ne, %22, %c0_i32_9 : i32
    scf.if %23 {
      %c0_12 = arith.constant 0 : index
      %c0_13 = arith.constant 0 : index
      %27 = vector.load %arg6[%c0_12, %c0_13] : memref<8x16xf32, #tpu.memory_space<vmem>>, vector<8x16xf32>
      %28 = vector.shape_cast %13 : vector<8x16xf32> to vector<1x8x16xf32>
      %cst_14 = arith.constant dense<0.000000e+00> : vector<8x16xf32>
      %29 = vector.multi_reduction <add>, %28, %cst_14 [0] : vector<1x8x16xf32> to vector<8x16xf32>
      %30 = arith.addf %27, %29 : vector<8x16xf32>
      %c0_15 = arith.constant 0 : index
      %c0_16 = arith.constant 0 : index
      %31 = vector.load %arg6[%c0_15, %c0_16] : memref<8x16xf32, #tpu.memory_space<vmem>>, vector<8x16xf32>
      tpu.vector_store %arg6[%c0_15, %c0_16], %30 {strides = array<i32>} : memref<8x16xf32, #tpu.memory_space<vmem>>, vector<8x16xf32>,
    } else {
    }
    %c0_i32_10 = arith.constant 0 : i32
    %24 = arith.cmpi eq, %arg1, %c0_i32_10 : i32
    %25 = arith.extui %24 : i1 to i32
    %c0_i32_11 = arith.constant 0 : i32
    %26 = arith.cmpi ne, %25, %c0_i32_11 : i32
    scf.if %26 {
      %27 = tpu.iota {dimensions = array<i32: 1>} : vector<8x16xi32>
      %c9_i32 = arith.constant 9 : i32
      %28 = vector.broadcast %c9_i32 : i32 to vector<8x16xi32>
      %29 = arith.cmpi slt, %27, %28 : vector<8x16xi32>
      %c0_12 = arith.constant 0 : index
      %c0_13 = arith.constant 0 : index
      %30 = vector.load %arg6[%c0_12, %c0_13] : memref<8x16xf32, #tpu.memory_space<vmem>>, vector<8x16xf32>
      %cst_14 = arith.constant 0.000000e+00 : f32
      %31 = vector.broadcast %cst_14 : f32 to vector<8x16xf32>
      %32 = arith.select %29, %30, %31 : vector<8x16xi1>, vector<8x16xf32>
      %33 = vector.shape_cast %32 : vector<8x16xf32> to vector<1x8x16xf32>
      %cst_15 = arith.constant dense<0.000000e+00> : vector<1xf32>
      %34 = vector.multi_reduction <add>, %33, %cst_15 [1, 2] : vector<1x8x16xf32> to vector<1xf32>
      %35 = vector.shape_cast %34 : vector<1xf32> to vector<1x1x1xf32>
      %36 = vector.extract %35[0, 0, 0] : f32 from vector<1x1x1xf32>
      %37 = vector.broadcast %36 : f32 to vector<1x1xf32>
      %c0_16 = arith.constant 0 : index
      %c0_17 = arith.constant 0 : index
      %c0_18 = arith.constant 0 : index
      %38 = vector.load %arg5[%c0_16, %c0_17, %c0_18] : memref<1x1x1xf32, #tpu.memory_space<vmem>>, vector<1x1x1xf32>
      %39 = vector.shape_cast %38 : vector<1x1x1xf32> to vector<1x1xf32>
      %40 = vector.shape_cast %37 : vector<1x1xf32> to vector<1x1x1xf32>
      tpu.vector_store %arg5[%c0_16, %c0_17, %c0_18], %40 {strides = array<i32>} : memref<1x1x1xf32, #tpu.memory_space<vmem>>, vector<1x1x1xf32>,
    } else {
    }
    return
  }
  func.func @transform_0(%arg0: i32, %arg1: i32) -> (i32, i32) {
    %c1_i32 = arith.constant 1 : i32
    %0 = arith.muli %arg0, %c1_i32 : i32
    %1 = arith.addi %0, %arg1 : i32
    %c0_i32 = arith.constant 0 : i32
    %c0_i32_0 = arith.constant 0 : i32
    return %1, %c0_i32 : i32, i32
  }
  func.func @transform_1(%arg0: i32, %arg1: i32) -> (i32, i32) {
    %c1_i32 = arith.constant 1 : i32
    %0 = arith.muli %arg0, %c1_i32 : i32
    %1 = arith.addi %0, %arg1 : i32
    %c0_i32 = arith.constant 0 : i32
    %c0_i32_0 = arith.constant 0 : i32
    return %1, %c0_i32 : i32, i32
  }
  func.func @transform_2(%arg0: i32, %arg1: i32) -> (i32, i32) {
    %c0_i32 = arith.constant 0 : i32
    %c0_i32_0 = arith.constant 0 : i32
    %c0_i32_1 = arith.constant 0 : i32
    return %c0_i32, %c0_i32_0 : i32, i32
  }
  func.func @transform_3(%arg0: i32, %arg1: i32) -> (i32, i32, i32) {
    %c0_i32 = arith.constant 0 : i32
    %c0_i32_0 = arith.constant 0 : i32
    %c0_i32_1 = arith.constant 0 : i32
    return %arg0, %c0_i32, %c0_i32_0 : i32, i32, i32
  }
}

</mosaic_0001>

<bundles_post_ra>
// kernel: tpu_custom_call.1
= control target key start
LH: loop header
LB: loop body
LE: loop exit
PB: predicated region body
PF: predicated region fallthrough
CT: control target
= control target key end

     0   :  { %8 = vsyncpa [#allocation4], 0  ;;  %s293_s0 = inlined_call_operand.vmem [shape: f32[8,16], index: 0, kind: input, shape index: {}]   ;;  %s294_s1 = inlined_call_operand.vmem [shape: s32[8,1], index: 1, kind: input, shape index: {}]   ;;  %s295_s2 = inlined_call_operand.hbm [shape: f32[10,16], index: 2, kind: input, shape index: {}]   ;;  %s296_s3 = inlined_call_operand.hbm [shape: f32[1,1,1], index: 3, kind: output, shape index: {}]  }
   0x1   :  { %9 = vsyncpa [#allocation5], 0  ;;  %s30_s14 = sshll.u32 %s295_s2, 4  ;;  %s255_s15 = smov [#allocation3]   ;;  %s31_s14 = int_to_ptr.hbm [resolvable:$true] %s30_s14 }
   0x2   :  { %s32_s16 = sshll.u32 %s255_s15, 4  ;;  %s256_s17 = smov 128   ;;  %s33_s16 = int_to_ptr.vmem [resolvable:$true] %s32_s16 }
   0x3   :  { %s257_s18 = smov 8  }
   0x4   :  { %38 = dma.hbm_to_vmem [thread:$0]  %s31_s14, 256, %s33_s16, [#allocation4], %s256_s17, %s256_s17, %s257_s18  }
   0x5   :  { %251 = dma.done.wait [#allocation4], 256  }
   0x6   :  { %252 = vsyncadd [#allocation4], 4294967040  ;;  %v258_v0 = vmov 0   ;;  %vm86_vm0 = vcmask 1041408   ;;  %v71_v1 = vld [vmem:[%s294_s1] sm:$0xff]  ;;  %v80_v3 = vld [vmem:[#allocation3] sm:$0xff]  ;;  %v72_v4 = vlaneseq }
   0x7   :  { %202 = vset.pattern.permute.xlu0 %v258_v0  ;;  %v81_v2 = vld [vmem:[#allocation3 + $0x8] sm:$0x3]  ;;  %vm82_vm1 = vcmask 80896   ;;  %v259_v7 = vmov 0.0   ;;  %vm69_vm3 = vcmask 130048   ;;  %v110_v9 = vld [vmem:[%s293_s0] sm:$0xff] }
   0x8   :  { %75 = vperm.xlu0 %202, %v71_v1   ;;  %192 = vmatpush.msk.msra.mxu0 %vm86_vm0, %v81_v2  ;;  %v73_v5 = vand.u32 127, %v72_v4  ;;  %70 = vst.msk [vmem:[#allocation2] sm:$0xff] %vm69_vm3, %v259_v7  ;;  %s260_s0 = smov [#allocation6]   ;;  %s169_s24 = sshll.u32 %s296_s3, 4  ;;  %vm160_vm5 = vcmask 0   ;;  %s170_s24 = int_to_ptr.hbm [resolvable:$true] %s169_s24 }
   0x9   :  { %s167_s1 = sshll.u32 %s260_s0, 4  ;;  %s168_s1 = int_to_ptr.vmem [resolvable:$true] %s167_s1 }
   0xa   :  { %105 = vmatpush.msra.mxu0 %v80_v3  ;;  %vm145_vm4 = vcmp.lt.s32.totalorder %v73_v5, 9 }
   0xf   :  { %v137_v12 = vld [vmem:[#allocation2] sm:$0xff] }
  0x7a   :  { %v76_v6 = vpop.permute.xlu0 %75 }
  0x7b   :  { %vm77_vm2 = vcmp.eq.s32.totalorder %v76_v6, %v73_v5 }
  0x7c   :  { %v191_v8 = vsel %vm77_vm2, 1.0, %v259_v7 }
  0x7d   :  { %193 = vmatmul.msk.f32.vlgmr.msra.gmra.mxu0 %vm82_vm1, %v191_v8 }
  0xfa   :  { %v107_v10 = vpop.f32.mrf.mxu0 }
  0xfb   :  { %v111_v11 = vsub.f32 %v110_v9, %v107_v10 }
  0xfd   :  { %v112_v13 = vmul.f32 %v111_v11, %v111_v11 }
  0xff   :  { %v139_v14 = vadd.f32 %v137_v12, %v112_v13 }
 0x101   :  { %141 = vst.msk [vmem:[#allocation2] sm:$0xff] %vm69_vm3, %v139_v14 }
 0x108   :  { %v146_v15 = vld [vmem:[#allocation2] sm:$0xff] }
 0x109   :  { %v147_v16 = vsel %vm145_vm4, %v146_v15, 0.0 }
 0x10a   :  { %v149_v17 = vsel %vm69_vm3, %v147_v16, 0.0 }
 0x10b   :  { %150 = vadd.xlane.f32.xlu0 %v149_v17 }
 0x17e   :  { %v151_v18 = vpop.xlane.xlu0 %150 }
 0x17f   :  { %v152_v19 = vrot.slane %v151_v18, 4 }
 0x181   :  { %v153_v20 = vadd.f32 %v152_v19, %v151_v18 }
 0x183   :  { %v154_v21 = vrot.slane %v153_v20, 2 }
 0x185   :  { %v155_v22 = vadd.f32 %v154_v21, %v153_v20 }
 0x187   :  { %v156_v23 = vrot.slane %v155_v22, 1 }
 0x189   :  { %v157_v24 = vadd.f32 %v156_v23, %v155_v22 }
 0x18b   :  { %194 = vpush %v157_v24 }
 0x1bc   :  { %s195_s25 = spop %194 }
 0x1bd   :  { %v159_v25 = vstv %s195_s25 }
 0x1be   :  { %161 = vst.msk [vmem:[#allocation6] sm:$0x1] %vm160_vm5, %v159_v25 }
 0x1bf   :  { %172 = dma.vmem_to_hbm [thread:$0]  %s168_s1, 16, %s170_s24, [#allocation5]  }
 0x1c0   :  { %253 = dma.done.wait [#allocation5], 16  }
 0x1c1   :  { %254 = vsyncadd [#allocation5], 4294967280 }
 0x1c2   :  { %177 = vsyncpa [#allocation4], 1 }
 0x1c3   :  { %178 = vsyncpa [#allocation5], 1 }

</bundles_post_ra>
